<compile_context>
chip_gen: v6e
topology: v6e:2x2x1
jax: 0.10.0
libtpu: 0.0.40
codegen_flags: <defaults>
</compile_context>

<pallas_src>
import functools

import jax
import jax.numpy as jnp
import numpy as np
from jax.experimental import pallas as pl
from jax.experimental.pallas import tpu as pltpu

# Fixed channel weights from the module's forward().
CHANNEL_WEIGHTS = np.array([0.1, 1.0, 0.1, 0.1, 0.1, 0.1], dtype=np.float32)

_MIB = 1024 * 1024


def _wmse_kernel(x_ref, y_ref, acc_ref, *, tn, P, tpc):
    """Accumulate per-period-row sums of squared errors.

    x_ref, y_ref : VMEM (tn, CS)    input / target rows (native dtype)
    acc_ref      : VMEM (1, P, CS)  f32 accumulator; row p holds the partial sum of
                                    diff**2 over all global rows n with n % P == p.
    """
    @pl.when(pl.program_id(1) == 0)
    def _():
        acc_ref[...] = jnp.zeros_like(acc_ref)

    diff = y_ref[...].astype(jnp.float32) - x_ref[...].astype(jnp.float32)
    sq = diff * diff                                        # (tn, CS), pure VPU

    if tn % P == 0:
        # Tile covers whole periods starting at phase 0: fold the replicas first
        # (VPU adds), then accumulate into the full resident (P, CS) block.
        reps = tn // P
        if reps == 1:
            folded = sq
        elif reps <= 8:
            folded = sq[0:P, :]
            for r in range(1, reps):
                folded = folded + sq[r * P:(r + 1) * P, :]
        else:
            folded = sq.reshape(reps, P, sq.shape[1]).sum(axis=0)
        acc_ref[0, :, :] += folded
    else:
        # Tile is an 8-aligned fraction of one period (tn divides P): accumulate
        # into the matching rows of the resident accumulator block.
        step = pl.program_id(0) * tpc + pl.program_id(1)
        nphase = P // tn
        off = (step % nphase) * tn                          # multiple of tn (tn % 8 == 0)
        off = pl.multiple_of(off, 8)
        acc_ref[0, pl.ds(off, tn), :] += sq


def _vmem_budget_bytes():
    """(physical_cap, vmem_limit_bytes, per_stream_tile_cap), generation aware."""
    cap = 64 * _MIB                                   # conservative default: v7x per-TC
    try:
        info = pltpu.get_tpu_info()
        cap = int(getattr(info, "vmem_capacity_bytes", cap)) or cap
    except Exception:
        pass
    if cap >= 128 * _MIB:                             # v5e / v6e (128 MiB VMEM)
        return cap, 96 * _MIB, 12 * _MIB
    return cap, 48 * _MIB, 8 * _MIB                   # v7x (64 MiB) or unknown


def _num_tensorcores():
    try:
        info = pltpu.get_tpu_info()
        for attr in ("num_cores", "core_count", "tensorcore_count", "num_tensorcores"):
            v = getattr(info, attr, None)
            if isinstance(v, (int, np.integer)) and int(v) > 0:
                return int(v)
    except Exception:
        pass
    return 1


def _pick_tile_rows(N, P, B, CS, itemsize, row_budget):
    """Largest valid tile row count that fits the per-stream row budget.

    Valid tn either divides P (and is 8-aligned, so in-kernel phase offsets stay
    8-aligned) or is a whole multiple of P that divides N (8-aligned or == N), so
    tiles never straddle a period boundary in an unaligned way and tn always
    divides N (no ragged edge tile -> no masking needed).
    """
    cands = {d for d in range(8, P + 1, 8) if P % d == 0}
    cands |= {m * P for m in range(1, B + 1)
              if B % m == 0 and ((m * P) % 8 == 0 or m * P == N)}
    cands.add(N)                                      # always legal (full second-to-last dim)
    fitting = [t for t in cands if t <= row_budget]
    if fitting:
        return max(fitting)
    # Nothing fits the budget: take the smallest valid tile; the caller raises
    # vmem_limit_bytes accordingly (bounded by physical capacity).
    return min(cands)


def custom_mse_loss(inp, tgt, spatial_weights):
    """JAX wrapper. inp/tgt: (B,F,T,C,H,W); spatial_weights: (F,H,W).

    Returns (scalar loss, per-channel weighted losses d).
    """
    B, F, T, C, H, W = inp.shape
    assert tgt.shape == inp.shape
    assert C == CHANNEL_WEIGHTS.shape[0]
    N, S, P, CS = B * F * T, H * W, F * T, C * H * W

    # Free metadata reshapes (no transpose, no HBM copy).
    x = inp.reshape(N, CS)
    y = tgt.reshape(N, CS)

    itemsize = jnp.dtype(inp.dtype).itemsize
    cap, vmem_limit, stream_cap = _vmem_budget_bytes()

    # Budget-accurate tile sizing: 2 input streams x 2 pipeline buffers, plus the
    # resident accumulator block (counted at 2 buffers, worst case) and headroom.
    acc_bytes = 2 * P * CS * 4
    headroom = 2 * _MIB
    per_stream = max(CS * itemsize,
                     min(stream_cap, (vmem_limit - acc_bytes - headroom) // 4))
    row_budget = max(1, per_stream // (CS * itemsize))

    tn = _pick_tile_rows(N, P, B, CS, itemsize, row_budget)
    ntiles = N // tn

    # If even the smallest valid tile exceeds the budget, raise the limit rather
    # than de-pipelining / failing, but stay well under physical VMEM.
    needed = 4 * tn * CS * itemsize + acc_bytes + headroom
    vmem_limit = int(min(max(vmem_limit, needed), cap - 8 * _MIB))

    # Split the serial reduction across TensorCores only if the chip has >1 (v7x).
    ncores = _num_tensorcores()
    nc = 2 if (ncores >= 2 and ntiles >= 2 and ntiles % 2 == 0) else 1
    tpc = ntiles // nc

    kernel = functools.partial(_wmse_kernel, tn=tn, P=P, tpc=tpc)
    xy_map = lambda p, n: (p * tpc + n, 0)

    partial_sums = pl.pallas_call(
        kernel,
        out_shape=jax.ShapeDtypeStruct((nc, P, CS), jnp.float32),
        grid_spec=pltpu.PrefetchScalarGridSpec(
            num_scalar_prefetch=0,
            grid=(nc, tpc),
            in_specs=[
                pl.BlockSpec((tn, CS), xy_map),      # input
                pl.BlockSpec((tn, CS), xy_map),      # target
            ],
            out_specs=pl.BlockSpec((1, P, CS), lambda p, n: (p, 0, 0)),
        ),
        compiler_params=pltpu.CompilerParams(
            # NOTE: on v7x, if plain "parallel" does not shard the leading axis
            # across the two TensorCores, switch it to pltpu.CORE_PARALLEL.
            dimension_semantics=("parallel", "arbitrary"),
            vmem_limit_bytes=vmem_limit,
        ),
    )(x, y)

    # Tiny JAX epilogue on (P, CS)-sized data: fold core shards, apply the spatial
    # weight once per period row, reduce to per-channel sums, apply channel
    # weights and the mean over (B,F,T,H,W).
    acc = partial_sums.sum(axis=0).reshape(F, T, C, H, W)
    sw = spatial_weights.astype(jnp.float32)[:, None, None, :, :]       # (F,1,1,H,W)
    per_channel = (acc * sw).sum(axis=(0, 1, 3, 4))                     # (C,)
    d = per_channel * jnp.asarray(CHANNEL_WEIGHTS) * jnp.float32(1.0 / (N * S))
    # TODO(synk): wandb.log of per-channel losses has no Pallas equivalent; `d` holds them.
    return jnp.mean(d), d


def reference_loss(inp, tgt, spatial_weights):
    """Pure-JAX reference matching the PyTorch forward."""
    sw = spatial_weights[None, :, None, None, :, :]                     # (1,F,1,1,H,W)
    d = (tgt - inp) ** 2 * sw
    d = d.mean(axis=(0, 1, 2, 4, 5)) * jnp.asarray(CHANNEL_WEIGHTS)
    return jnp.mean(d), d


if __name__ == "__main__":
    key = jax.random.PRNGKey(0)
    k1, k2, k3 = jax.random.split(key, 3)

    # Small shapes consistent with the module: (B, F, T, C, H, W)
    B, F, T, C, H, W = 2, 12, 2, 6, 16, 16
    inp = jax.random.normal(k1, (B, F, T, C, H, W), dtype=jnp.float32)
    tgt = jax.random.normal(k2, (B, F, T, C, H, W), dtype=jnp.float32)
    # Deterministic synthetic cell-area weights (stand-in for the .nc grid-area file).
    spatial_w = jax.random.uniform(
        k3, (F, H, W), dtype=jnp.float32, minval=0.5, maxval=1.5
    )

    loss, d = custom_mse_loss(inp, tgt, spatial_w)
    loss = jax.block_until_ready(loss)
    d = jax.block_until_ready(d)

    ref_loss, ref_d = reference_loss(inp, tgt, spatial_w)
    assert np.allclose(np.asarray(d), np.asarray(ref_d), rtol=1e-5, atol=1e-6), (d, ref_d)
    assert np.allclose(np.asarray(loss), np.asarray(ref_loss), rtol=1e-5, atol=1e-6), (
        loss, ref_loss)
    print("KERNEL_OK")
</pallas_src>

<mosaic_0001>
module attributes {stable_mosaic.version = 11 : i64} {
  func.func @_wmse_kernel(%arg0: i32, %arg1: i32, %arg2: memref<48x1536xf32, #tpu.memory_space<vmem>>, %arg3: memref<48x1536xf32, #tpu.memory_space<vmem>>, %arg4: memref<1x24x1536xf32, #tpu.memory_space<vmem>>) attributes {dimension_semantics = [#tpu.dimension_semantics<parallel>, #tpu.dimension_semantics<arbitrary>], iteration_bounds = array<i64: 1, 1>, scalar_prefetch = 0 : i64, scratch_operands = 0 : i64, tpu.core_type = #tpu.core_type<tc>, window_params = [{transform_indices = @transform_0, window_bounds = array<i64: 48, 1536>}, {transform_indices = @transform_1, window_bounds = array<i64: 48, 1536>}, {transform_indices = @transform_2, window_bounds = array<i64: 1, 24, 1536>}]} {
    %c0_i32 = arith.constant 0 : i32
    %0 = arith.cmpi eq, %arg1, %c0_i32 : i32
    %1 = arith.extui %0 : i1 to i32
    %c0_i32_0 = arith.constant 0 : i32
    %2 = arith.cmpi ne, %1, %c0_i32_0 : i32
    scf.if %2 {
      %cst = arith.constant 0.000000e+00 : f32
      %16 = vector.broadcast %cst : f32 to vector<1x24x1536xf32>
      %c0_10 = arith.constant 0 : index
      %c0_11 = arith.constant 0 : index
      %c0_12 = arith.constant 0 : index
      %17 = vector.load %arg4[%c0_10, %c0_11, %c0_12] : memref<1x24x1536xf32, #tpu.memory_space<vmem>>, vector<1x24x1536xf32>
      tpu.vector_store %arg4[%c0_10, %c0_11, %c0_12], %16 {strides = array<i32>} : memref<1x24x1536xf32, #tpu.memory_space<vmem>>, vector<1x24x1536xf32>,
    } else {
    }
    %c0 = arith.constant 0 : index
    %c0_1 = arith.constant 0 : index
    %3 = vector.load %arg3[%c0, %c0_1] : memref<48x1536xf32, #tpu.memory_space<vmem>>, vector<48x1536xf32>
    %c0_2 = arith.constant 0 : index
    %c0_3 = arith.constant 0 : index
    %4 = vector.load %arg2[%c0_2, %c0_3] : memref<48x1536xf32, #tpu.memory_space<vmem>>, vector<48x1536xf32>
    %5 = arith.subf %3, %4 : vector<48x1536xf32>
    %6 = arith.mulf %5, %5 : vector<48x1536xf32>
    %7 = vector.extract_strided_slice %6 {offsets = [0, 0], sizes = [24, 1536], strides = [1, 1]} : vector<48x1536xf32> to vector<24x1536xf32>
    %8 = vector.extract_strided_slice %6 {offsets = [24, 0], sizes = [24, 1536], strides = [1, 1]} : vector<48x1536xf32> to vector<24x1536xf32>
    %9 = arith.addf %7, %8 : vector<24x1536xf32>
    %c0_4 = arith.constant 0 : index
    %c0_5 = arith.constant 0 : index
    %c0_6 = arith.constant 0 : index
    %10 = vector.load %arg4[%c0_4, %c0_5, %c0_6] : memref<1x24x1536xf32, #tpu.memory_space<vmem>>, vector<1x24x1536xf32>
    %11 = vector.shape_cast %10 : vector<1x24x1536xf32> to vector<24x1536xf32>
    %12 = arith.addf %11, %9 : vector<24x1536xf32>
    %c0_7 = arith.constant 0 : index
    %c0_8 = arith.constant 0 : index
    %c0_9 = arith.constant 0 : index
    %13 = vector.load %arg4[%c0_7, %c0_8, %c0_9] : memref<1x24x1536xf32, #tpu.memory_space<vmem>>, vector<1x24x1536xf32>
    %14 = vector.shape_cast %13 : vector<1x24x1536xf32> to vector<24x1536xf32>
    %15 = vector.shape_cast %12 : vector<24x1536xf32> to vector<1x24x1536xf32>
    tpu.vector_store %arg4[%c0_7, %c0_8, %c0_9], %15 {strides = array<i32>} : memref<1x24x1536xf32, #tpu.memory_space<vmem>>, vector<1x24x1536xf32>,
    return
  }
  func.func @transform_0(%arg0: i32, %arg1: i32) -> (i32, i32) {
    %c1_i32 = arith.constant 1 : i32
    %0 = arith.muli %arg0, %c1_i32 : i32
    %1 = arith.addi %0, %arg1 : i32
    %c0_i32 = arith.constant 0 : i32
    %c0_i32_0 = arith.constant 0 : i32
    return %1, %c0_i32 : i32, i32
  }
  func.func @transform_1(%arg0: i32, %arg1: i32) -> (i32, i32) {
    %c1_i32 = arith.constant 1 : i32
    %0 = arith.muli %arg0, %c1_i32 : i32
    %1 = arith.addi %0, %arg1 : i32
    %c0_i32 = arith.constant 0 : i32
    %c0_i32_0 = arith.constant 0 : i32
    return %1, %c0_i32 : i32, i32
  }
  func.func @transform_2(%arg0: i32, %arg1: i32) -> (i32, i32, i32) {
    %c0_i32 = arith.constant 0 : i32
    %c0_i32_0 = arith.constant 0 : i32
    %c0_i32_1 = arith.constant 0 : i32
    return %arg0, %c0_i32, %c0_i32_0 : i32, i32, i32
  }
}

</mosaic_0001>

<bundles_post_ra>
// kernel: tpu_custom_call.1
= control target key start
LH: loop header
LB: loop body
LE: loop exit
PB: predicated region body
PF: predicated region fallthrough
CT: control target
= control target key end

     0   :  { %7 = vsyncpa [#allocation3], 0  ;;  %s654_s0 = inlined_call_operand.hbm [shape: f32[48,1536], index: 0, kind: input, shape index: {}]   ;;  %s655_s1 = inlined_call_operand.hbm [shape: f32[48,1536], index: 1, kind: input, shape index: {}]   ;;  %s656_s2 = inlined_call_operand.hbm [shape: f32[1,24,1536], index: 2, kind: output, shape index: {}]  }
   0x1   :  { %8 = vsyncpa [#allocation6], 0 }
   0x2   :  { %9 = vsyncpa [#allocation4], 0  ;;  %s616_s9 = smov [#allocation2]  }
   0x3   :  { %s20_s10 = sshll.u32 %s616_s9, 4  ;;  %s21_s10 = int_to_ptr.vmem [resolvable:$true] %s20_s10 }
   0x4   :  { %s558_s11 = scalar_lea.vmem %s21_s10, 9216  ;;  %p563_p1 = scmp.lt.s32.totalorder %s21_s10, %s21_s10 }
   0x5   :  { %p559_p0 = scmp.ne.s32.totalorder %s21_s10, %s558_s11  ;;  %p564_p2 = scmp.lt.s32.totalorder %s558_s11, %s558_s11 }
   0x7   :  { %p565_p3 = por %p564_p2, %p563_p1 }
   0x9   :  { %p566_p4 = pnand %p565_p3, %p559_p0 }
   0xb   :  { %569 = shalt.err (!%p566_p4)
}
   0xc   :  { %s617_s12 = smov 1536   ;;  %s618_s13 = smov 96  }
   0xd   :  { %26 = dma.hbm_to_vmem [thread:$0]  %s654_s0, 9216, %s21_s10, [#allocation3], %s617_s12, %s617_s12, %s618_s13  }
   0xe   :  { %s619_s16 = smov [#allocation5]  }
   0xf   :  { %s37_s17 = sshll.u32 %s619_s16, 4  ;;  %s38_s17 = int_to_ptr.vmem [resolvable:$true] %s37_s17 }
  0x10   :  { %s578_s18 = scalar_lea.vmem %s38_s17, 9216  ;;  %p583_p6 = scmp.lt.s32.totalorder %s38_s17, %s38_s17 }
  0x11   :  { %p579_p5 = scmp.ne.s32.totalorder %s38_s17, %s578_s18  ;;  %p584_p7 = scmp.lt.s32.totalorder %s578_s18, %s578_s18 }
  0x13   :  { %p585_p8 = por %p584_p7, %p583_p6 }
  0x15   :  { %p586_p9 = pnand %p585_p8, %p579_p5 }
  0x17   :  { %589 = shalt.err (!%p586_p9)
}
  0x18   :  { %43 = dma.hbm_to_vmem [thread:$0]  %s655_s1, 9216, %s38_s17, [#allocation6], %s617_s12, %s617_s12, %s618_s13  }
  0x19   :  { %610 = dma.done.wait [#allocation3], 9216  }
  0x1a   :  { %611 = vsyncadd [#allocation3], 4294958080 }
  0x1b   :  { %612 = dma.done.wait [#allocation6], 9216  }
  0x1c   :  { %613 = vsyncadd [#allocation6], 4294958080  ;;  %v94_v0 = vld [vmem:[#allocation5] sm:$0xff]  ;;  %v95_v5 = vld [vmem:[#allocation5 + $0x8] sm:$0xff]  ;;  %s620_s0 = smov [#allocation7]  }
  0x1d   :  { %v130_v1 = vld [vmem:[#allocation5 + $0x120] sm:$0xff]  ;;  %v131_v6 = vld [vmem:[#allocation5 + $0x128] sm:$0xff]  ;;  %v96_v10 = vld [vmem:[#allocation5 + $0x10] sm:$0xff]  ;;  %s531_s1 = sshll.u32 %s620_s0, 4  ;;  %s532_s1 = int_to_ptr.vmem [resolvable:$true] %s531_s1 }
  0x1e   :  { %v166_v2 = vld [vmem:[#allocation2] sm:$0xff]  ;;  %v167_v8 = vld [vmem:[#allocation2 + $0x8] sm:$0xff]  ;;  %v132_v14 = vld [vmem:[#allocation5 + $0x130] sm:$0xff]  ;;  %s590_s21 = scalar_lea.vmem %s532_s1, 4608  ;;  %p595_p11 = scmp.lt.s32.totalorder %s532_s1, %s532_s1 }
  0x1f   :  { %v202_v3 = vld [vmem:[#allocation2 + $0x120] sm:$0xff]  ;;  %v238_v4 = vsub.f32 %v94_v0, %v166_v2  ;;  %v203_v9 = vld [vmem:[#allocation2 + $0x128] sm:$0xff]  ;;  %v239_v12 = vsub.f32 %v95_v5, %v167_v8  ;;  %v168_v15 = vld [vmem:[#allocation2 + $0x10] sm:$0xff]  ;;  %p591_p10 = scmp.ne.s32.totalorder %s532_s1, %s590_s21  ;;  %p596_p12 = scmp.lt.s32.totalorder %s590_s21, %s590_s21 }
  0x20   :  { %v274_v7 = vsub.f32 %v130_v1, %v202_v3  ;;  %v275_v13 = vsub.f32 %v131_v6, %v203_v9  ;;  %v204_v16 = vld [vmem:[#allocation2 + $0x130] sm:$0xff]  ;;  %v240_v18 = vsub.f32 %v96_v10, %v168_v15  ;;  %v97_v20 = vld [vmem:[#allocation5 + $0x18] sm:$0xff]  ;;  %v98_v27 = vld [vmem:[#allocation5 + $0x20] sm:$0xff] }
  0x21   :  { %v310_v11 = vmul.f32 %v238_v4, %v238_v4  ;;  %v276_v19 = vsub.f32 %v132_v14, %v204_v16  ;;  %v133_v21 = vld [vmem:[#allocation5 + $0x138] sm:$0xff]  ;;  %v311_v23 = vmul.f32 %v239_v12, %v239_v12  ;;  %v134_v28 = vld [vmem:[#allocation5 + $0x140] sm:$0xff]  ;;  %v99_v35 = vld [vmem:[#allocation5 + $0x28] sm:$0xff]  ;;  %p597_p13 = por %p596_p12, %p595_p11 }
  0x22   :  { %v346_v17 = vmul.f32 %v274_v7, %v274_v7  ;;  %v169_v22 = vld [vmem:[#allocation2 + $0x18] sm:$0xff]  ;;  %v347_v24 = vmul.f32 %v275_v13, %v275_v13  ;;  %v312_v30 = vmul.f32 %v240_v18, %v240_v18  ;;  %v170_v33 = vld [vmem:[#allocation2 + $0x20] sm:$0xff]  ;;  %v135_v40 = vld [vmem:[#allocation5 + $0x148] sm:$0xff] }
  0x23   :  { %v205_v25 = vld [vmem:[#allocation2 + $0x138] sm:$0xff]  ;;  %v241_v26 = vsub.f32 %v97_v20, %v169_v22  ;;  %v348_v31 = vmul.f32 %v276_v19, %v276_v19  ;;  %v206_v34 = vld [vmem:[#allocation2 + $0x140] sm:$0xff]  ;;  %v242_v38 = vsub.f32 %v98_v27, %v170_v33  ;;  %v171_v41 = vld [vmem:[#allocation2 + $0x28] sm:$0xff]  ;;  %p598_p0 = pnand %p597_p13, %p591_p10 }
  0x24   :  { %v382_v29 = vadd.f32 %v346_v17, %v310_v11  ;;  %v277_v32 = vsub.f32 %v133_v21, %v205_v25  ;;  %v383_v36 = vadd.f32 %v347_v24, %v311_v23  ;;  %v278_v39 = vsub.f32 %v134_v28, %v206_v34  ;;  %v207_v42 = vld [vmem:[#allocation2 + $0x148] sm:$0xff]  ;;  %v100_v46 = vld [vmem:[#allocation5 + $0x30] sm:$0xff]  ;;  %v101_v53 = vld [vmem:[#allocation5 + $0x38] sm:$0xff] }
  0x25   :  { %v313_v37 = vmul.f32 %v241_v26, %v241_v26  ;;  %v384_v43 = vadd.f32 %v348_v31, %v312_v30  ;;  %v243_v45 = vsub.f32 %v99_v35, %v171_v41  ;;  %v136_v47 = vld [vmem:[#allocation5 + $0x150] sm:$0xff]  ;;  %v314_v49 = vmul.f32 %v242_v38, %v242_v38  ;;  %v137_v54 = vld [vmem:[#allocation5 + $0x158] sm:$0xff]  ;;  %v102_v60 = vld [vmem:[#allocation5 + $0x40] sm:$0xff] }
  0x26   :  { %v349_v44 = vmul.f32 %v277_v32, %v277_v32  ;;  %v172_v48 = vld [vmem:[#allocation2 + $0x30] sm:$0xff]  ;;  %v350_v50 = vmul.f32 %v278_v39, %v278_v39  ;;  %v279_v51 = vsub.f32 %v135_v40, %v207_v42  ;;  %490 = vst [vmem:[#allocation7] sm:$0xff] %v382_v29  ;;  %v173_v58 = vld [vmem:[#allocation2 + $0x38] sm:$0xff]  ;;  %491 = vst [vmem:[#allocation7 + $0x8] sm:$0xff] %v383_v36 }
  0x27   :  { %v208_v52 = vld [vmem:[#allocation2 + $0x150] sm:$0xff]  ;;  %v315_v56 = vmul.f32 %v243_v45, %v243_v45  ;;  %v244_v57 = vsub.f32 %v100_v46, %v172_v48  ;;  %v209_v59 = vld [vmem:[#allocation2 + $0x158] sm:$0xff]  ;;  %v245_v0 = vsub.f32 %v101_v53, %v173_v58  ;;  %v138_v1 = vld [vmem:[#allocation5 + $0x160] sm:$0xff]  ;;  %492 = vst [vmem:[#allocation7 + $0x10] sm:$0xff] %v384_v43 }
  0x28   :  { %v385_v55 = vadd.f32 %v349_v44, %v313_v37  ;;  %v386_v61 = vadd.f32 %v350_v50, %v314_v49  ;;  %v351_v62 = vmul.f32 %v279_v51, %v279_v51  ;;  %v280_v63 = vsub.f32 %v136_v47, %v208_v52  ;;  %v174_v2 = vld [vmem:[#allocation2 + $0x40] sm:$0xff]  ;;  %v103_v7 = vld [vmem:[#allocation5 + $0x48] sm:$0xff]  ;;  %v104_v14 = vld [vmem:[#allocation5 + $0x50] sm:$0xff] }
  0x29   :  { %v210_v3 = vld [vmem:[#allocation2 + $0x160] sm:$0xff]  ;;  %v316_v4 = vmul.f32 %v244_v57, %v244_v57  ;;  %v281_v5 = vsub.f32 %v137_v54, %v209_v59  ;;  %v246_v6 = vsub.f32 %v102_v60, %v174_v2  ;;  %v139_v8 = vld [vmem:[#allocation5 + $0x168] sm:$0xff]  ;;  %v317_v12 = vmul.f32 %v245_v0, %v245_v0  ;;  %v140_v15 = vld [vmem:[#allocation5 + $0x170] sm:$0xff] }
  0x2a   :  { %v175_v9 = vld [vmem:[#allocation2 + $0x48] sm:$0xff]  ;;  %v387_v10 = vadd.f32 %v351_v62, %v315_v56  ;;  %v352_v11 = vmul.f32 %v280_v63, %v280_v63  ;;  %493 = vst [vmem:[#allocation7 + $0x18] sm:$0xff] %v385_v55  ;;  %v282_v17 = vsub.f32 %v138_v1, %v210_v3  ;;  %v176_v20 = vld [vmem:[#allocation2 + $0x50] sm:$0xff]  ;;  %v105_v22 = vld [vmem:[#allocation5 + $0x58] sm:$0xff] }
  0x2b   :  { %v211_v13 = vld [vmem:[#allocation2 + $0x168] sm:$0xff]  ;;  %v353_v16 = vmul.f32 %v281_v5, %v281_v5  ;;  %v318_v18 = vmul.f32 %v246_v6, %v246_v6  ;;  %v247_v19 = vsub.f32 %v103_v7, %v175_v9  ;;  %v212_v21 = vld [vmem:[#allocation2 + $0x170] sm:$0xff]  ;;  %494 = vst [vmem:[#allocation7 + $0x20] sm:$0xff] %v386_v61  ;;  %v248_v25 = vsub.f32 %v104_v14, %v176_v20  ;;  %v141_v26 = vld [vmem:[#allocation5 + $0x178] sm:$0xff] }
  0x2c   :  { %v388_v23 = vadd.f32 %v352_v11, %v316_v4  ;;  %v283_v24 = vsub.f32 %v139_v8, %v211_v13  ;;  %v177_v27 = vld [vmem:[#allocation2 + $0x58] sm:$0xff]  ;;  %v354_v30 = vmul.f32 %v282_v17, %v282_v17  ;;  %v284_v32 = vsub.f32 %v140_v15, %v212_v21  ;;  %v106_v33 = vld [vmem:[#allocation5 + $0x60] sm:$0xff]  ;;  %495 = vst [vmem:[#allocation7 + $0x28] sm:$0xff] %v387_v10  ;;  %v107_v40 = vld [vmem:[#allocation5 + $0x68] sm:$0xff] }
  0x2d   :  { %v213_v28 = vld [vmem:[#allocation2 + $0x178] sm:$0xff]  ;;  %v389_v29 = vadd.f32 %v353_v16, %v317_v12  ;;  %v319_v31 = vmul.f32 %v247_v19, %v247_v19  ;;  %v142_v34 = vld [vmem:[#allocation5 + $0x180] sm:$0xff]  ;;  %v320_v37 = vmul.f32 %v248_v25, %v248_v25  ;;  %v249_v38 = vsub.f32 %v105_v22, %v177_v27  ;;  %v143_v44 = vld [vmem:[#allocation5 + $0x188] sm:$0xff] }
  0x2e   :  { %v178_v35 = vld [vmem:[#allocation2 + $0x60] sm:$0xff]  ;;  %v355_v36 = vmul.f32 %v283_v24, %v283_v24  ;;  %v390_v41 = vadd.f32 %v354_v30, %v318_v18  ;;  %v356_v42 = vmul.f32 %v284_v32, %v284_v32  ;;  %v285_v43 = vsub.f32 %v141_v26, %v213_v28  ;;  %v179_v45 = vld [vmem:[#allocation2 + $0x68] sm:$0xff]  ;;  %496 = vst [vmem:[#allocation7 + $0x30] sm:$0xff] %v388_v23  ;;  %v108_v51 = vld [vmem:[#allocation5 + $0x70] sm:$0xff] }
  0x2f   :  { %v214_v39 = vld [vmem:[#allocation2 + $0x180] sm:$0xff]  ;;  %v215_v46 = vld [vmem:[#allocation2 + $0x188] sm:$0xff]  ;;  %v321_v48 = vmul.f32 %v249_v38, %v249_v38  ;;  %v250_v49 = vsub.f32 %v106_v33, %v178_v35  ;;  %v144_v52 = vld [vmem:[#allocation5 + $0x190] sm:$0xff]  ;;  %497 = vst [vmem:[#allocation7 + $0x38] sm:$0xff] %v389_v29  ;;  %v251_v56 = vsub.f32 %v107_v40, %v179_v45 }
  0x30   :  { %v391_v47 = vadd.f32 %v355_v36, %v319_v31  ;;  %v286_v50 = vsub.f32 %v142_v34, %v214_v39  ;;  %v180_v53 = vld [vmem:[#allocation2 + $0x70] sm:$0xff]  ;;  %v392_v54 = vadd.f32 %v356_v42, %v320_v37  ;;  %v357_v55 = vmul.f32 %v285_v43, %v285_v43  ;;  %v109_v58 = vld [vmem:[#allocation5 + $0x78] sm:$0xff]  ;;  %v110_v1 = vld [vmem:[#allocation5 + $0x80] sm:$0xff]  ;;  %498 = vst [vmem:[#allocation7 + $0x40] sm:$0xff] %v390_v41 }
  0x31   :  { %v216_v57 = vld [vmem:[#allocation2 + $0x190] sm:$0xff]  ;;  %v181_v59 = vld [vmem:[#allocation2 + $0x78] sm:$0xff]  ;;  %v322_v60 = vmul.f32 %v250_v49, %v250_v49  ;;  %v287_v62 = vsub.f32 %v143_v44, %v215_v46  ;;  %v323_v3 = vmul.f32 %v251_v56, %v251_v56  ;;  %v252_v4 = vsub.f32 %v108_v51, %v180_v53  ;;  %v146_v5 = vld [vmem:[#allocation5 + $0x1a0] sm:$0xff] }
  0x32   :  { %v358_v61 = vmul.f32 %v286_v50, %v286_v50  ;;  %v145_v63 = vld [vmem:[#allocation5 + $0x198] sm:$0xff]  ;;  %v393_v2 = vadd.f32 %v357_v55, %v321_v48  ;;  %v182_v6 = vld [vmem:[#allocation2 + $0x80] sm:$0xff]  ;;  %499 = vst [vmem:[#allocation7 + $0x48] sm:$0xff] %v391_v47  ;;  %v288_v10 = vsub.f32 %v144_v52, %v216_v57  ;;  %v253_v11 = vsub.f32 %v109_v58, %v181_v59  ;;  %v111_v12 = vld [vmem:[#allocation5 + $0x88] sm:$0xff] }
  0x33   :  { %v217_v0 = vld [vmem:[#allocation2 + $0x198] sm:$0xff]  ;;  %v218_v7 = vld [vmem:[#allocation2 + $0x1a0] sm:$0xff]  ;;  %v359_v9 = vmul.f32 %v287_v62, %v287_v62  ;;  %v147_v13 = vld [vmem:[#allocation5 + $0x1a8] sm:$0xff]  ;;  %500 = vst [vmem:[#allocation7 + $0x50] sm:$0xff] %v392_v54  ;;  %v324_v15 = vmul.f32 %v252_v4, %v252_v4  ;;  %v254_v17 = vsub.f32 %v110_v1, %v182_v6 }
  0x34   :  { %v394_v8 = vadd.f32 %v358_v61, %v322_v60  ;;  %v183_v14 = vld [vmem:[#allocation2 + $0x88] sm:$0xff]  ;;  %v289_v16 = vsub.f32 %v145_v63, %v217_v0  ;;  %v112_v19 = vld [vmem:[#allocation5 + $0x90] sm:$0xff]  ;;  %v360_v22 = vmul.f32 %v288_v10, %v288_v10  ;;  %v325_v23 = vmul.f32 %v253_v11, %v253_v11  ;;  %501 = vst [vmem:[#allocation7 + $0x58] sm:$0xff] %v393_v2  ;;  %v113_v30 = vld [vmem:[#allocation5 + $0x98] sm:$0xff] }
  0x35   :  { %v219_v18 = vld [vmem:[#allocation2 + $0x1a8] sm:$0xff]  ;;  %v184_v20 = vld [vmem:[#allocation2 + $0x90] sm:$0xff]  ;;  %v395_v21 = vadd.f32 %v359_v9, %v323_v3  ;;  %v290_v27 = vsub.f32 %v146_v5, %v218_v7  ;;  %v326_v28 = vmul.f32 %v254_v17, %v254_v17  ;;  %v255_v29 = vsub.f32 %v111_v12, %v183_v14  ;;  %v185_v31 = vld [vmem:[#allocation2 + $0x98] sm:$0xff] }
  0x36   :  { %v148_v24 = vld [vmem:[#allocation5 + $0x1b0] sm:$0xff]  ;;  %v361_v26 = vmul.f32 %v289_v16, %v289_v16  ;;  %502 = vst [vmem:[#allocation7 + $0x60] sm:$0xff] %v394_v8  ;;  %v396_v32 = vadd.f32 %v360_v22, %v324_v15  ;;  %v291_v33 = vsub.f32 %v147_v13, %v219_v18  ;;  %v256_v34 = vsub.f32 %v112_v19, %v184_v20  ;;  %v149_v35 = vld [vmem:[#allocation5 + $0x1b8] sm:$0xff]  ;;  %v114_v37 = vld [vmem:[#allocation5 + $0xa0] sm:$0xff] }
  0x37   :  { %v220_v25 = vld [vmem:[#allocation2 + $0x1b0] sm:$0xff]  ;;  %v221_v36 = vld [vmem:[#allocation2 + $0x1b8] sm:$0xff]  ;;  %v362_v39 = vmul.f32 %v290_v27, %v290_v27  ;;  %v327_v40 = vmul.f32 %v255_v29, %v255_v29  ;;  %v150_v42 = vld [vmem:[#allocation5 + $0x1c0] sm:$0xff]  ;;  %503 = vst [vmem:[#allocation7 + $0x68] sm:$0xff] %v395_v21  ;;  %v257_v47 = vsub.f32 %v113_v30, %v185_v31 }
  0x38   :  { %v397_v38 = vadd.f32 %v361_v26, %v325_v23  ;;  %v292_v41 = vsub.f32 %v148_v24, %v220_v25  ;;  %v186_v43 = vld [vmem:[#allocation2 + $0xa0] sm:$0xff]  ;;  %v363_v45 = vmul.f32 %v291_v33, %v291_v33  ;;  %v328_v46 = vmul.f32 %v256_v34, %v256_v34  ;;  %v115_v48 = vld [vmem:[#allocation5 + $0xa8] sm:$0xff]  ;;  %v116_v55 = vld [vmem:[#allocation5 + $0xb0] sm:$0xff]  ;;  %504 = vst [vmem:[#allocation7 + $0x70] sm:$0xff] %v396_v32 }
  0x39   :  { %v222_v44 = vld [vmem:[#allocation2 + $0x1c0] sm:$0xff]  ;;  %v187_v49 = vld [vmem:[#allocation2 + $0xa8] sm:$0xff]  ;;  %v398_v50 = vadd.f32 %v362_v39, %v326_v28  ;;  %v293_v52 = vsub.f32 %v149_v35, %v221_v36  ;;  %v329_v57 = vmul.f32 %v257_v47, %v257_v47  ;;  %v258_v58 = vsub.f32 %v114_v37, %v186_v43  ;;  %v152_v60 = vld [vmem:[#allocation5 + $0x1d0] sm:$0xff] }
  0x3a   :  { %v364_v51 = vmul.f32 %v292_v41, %v292_v41  ;;  %v151_v53 = vld [vmem:[#allocation5 + $0x1c8] sm:$0xff]  ;;  %v399_v56 = vadd.f32 %v363_v45, %v327_v40  ;;  %v294_v59 = vsub.f32 %v150_v42, %v222_v44  ;;  %v188_v61 = vld [vmem:[#allocation2 + $0xb0] sm:$0xff]  ;;  %505 = vst [vmem:[#allocation7 + $0x78] sm:$0xff] %v397_v38  ;;  %v259_v1 = vsub.f32 %v115_v48, %v187_v49  ;;  %v117_v2 = vld [vmem:[#allocation5 + $0xb8] sm:$0xff] }
  0x3b   :  { %v223_v54 = vld [vmem:[#allocation2 + $0x1c8] sm:$0xff]  ;;  %v224_v62 = vld [vmem:[#allocation2 + $0x1d0] sm:$0xff]  ;;  %v365_v0 = vmul.f32 %v293_v52, %v293_v52  ;;  %v153_v3 = vld [vmem:[#allocation5 + $0x1d8] sm:$0xff]  ;;  %v330_v5 = vmul.f32 %v258_v58, %v258_v58  ;;  %506 = vst [vmem:[#allocation7 + $0x80] sm:$0xff] %v398_v50  ;;  %v260_v13 = vsub.f32 %v116_v55, %v188_v61 }
  0x3c   :  { %v400_v63 = vadd.f32 %v364_v51, %v328_v46  ;;  %v189_v4 = vld [vmem:[#allocation2 + $0xb8] sm:$0xff]  ;;  %v366_v6 = vmul.f32 %v294_v59, %v294_v59  ;;  %v295_v7 = vsub.f32 %v151_v53, %v223_v54  ;;  %v118_v9 = vld [vmem:[#allocation5 + $0xc0] sm:$0xff]  ;;  %v331_v12 = vmul.f32 %v259_v1, %v259_v1  ;;  %507 = vst [vmem:[#allocation7 + $0x88] sm:$0xff] %v399_v56  ;;  %v119_v20 = vld [vmem:[#allocation5 + $0xc8] sm:$0xff] }
  0x3d   :  { %v225_v8 = vld [vmem:[#allocation2 + $0x1d8] sm:$0xff]  ;;  %v190_v10 = vld [vmem:[#allocation2 + $0xc0] sm:$0xff]  ;;  %v401_v11 = vadd.f32 %v365_v0, %v329_v57  ;;  %v296_v18 = vsub.f32 %v152_v60, %v224_v62  ;;  %v261_v19 = vsub.f32 %v117_v2, %v189_v4  ;;  %v155_v21 = vld [vmem:[#allocation5 + $0x1e8] sm:$0xff]  ;;  %v332_v23 = vmul.f32 %v260_v13, %v260_v13 }
  0x3e   :  { %v154_v14 = vld [vmem:[#allocation5 + $0x1e0] sm:$0xff]  ;;  %v402_v16 = vadd.f32 %v366_v6, %v330_v5  ;;  %v367_v17 = vmul.f32 %v295_v7, %v295_v7  ;;  %v191_v22 = vld [vmem:[#allocation2 + $0xc8] sm:$0xff]  ;;  %508 = vst [vmem:[#allocation7 + $0x90] sm:$0xff] %v400_v63  ;;  %v297_v24 = vsub.f32 %v153_v3, %v225_v8  ;;  %v262_v25 = vsub.f32 %v118_v9, %v190_v10  ;;  %v120_v27 = vld [vmem:[#allocation5 + $0xd0] sm:$0xff] }
  0x3f   :  { %v226_v15 = vld [vmem:[#allocation2 + $0x1e0] sm:$0xff]  ;;  %v227_v26 = vld [vmem:[#allocation2 + $0x1e8] sm:$0xff]  ;;  %v192_v28 = vld [vmem:[#allocation2 + $0xd0] sm:$0xff]  ;;  %v368_v30 = vmul.f32 %v296_v18, %v296_v18  ;;  %v333_v31 = vmul.f32 %v261_v19, %v261_v19  ;;  %509 = vst [vmem:[#allocation7 + $0x98] sm:$0xff] %v401_v11  ;;  %v263_v37 = vsub.f32 %v119_v20, %v191_v22 }
  0x40   :  { %v403_v29 = vadd.f32 %v367_v17, %v331_v12  ;;  %v156_v32 = vld [vmem:[#allocation5 + $0x1f0] sm:$0xff]  ;;  %v369_v34 = vmul.f32 %v297_v24, %v297_v24  ;;  %v298_v35 = vsub.f32 %v154_v14, %v226_v15  ;;  %v334_v36 = vmul.f32 %v262_v25, %v262_v25  ;;  %v121_v38 = vld [vmem:[#allocation5 + $0xd8] sm:$0xff]  ;;  %510 = vst [vmem:[#allocation7 + $0xa0] sm:$0xff] %v402_v16  ;;  %v122_v45 = vld [vmem:[#allocation5 + $0xe0] sm:$0xff] }
  0x41   :  { %v228_v33 = vld [vmem:[#allocation2 + $0x1f0] sm:$0xff]  ;;  %v193_v39 = vld [vmem:[#allocation2 + $0xd8] sm:$0xff]  ;;  %v404_v40 = vadd.f32 %v368_v30, %v332_v23  ;;  %v299_v41 = vsub.f32 %v155_v21, %v227_v26  ;;  %v264_v42 = vsub.f32 %v120_v27, %v192_v28  ;;  %v335_v48 = vmul.f32 %v263_v37, %v263_v37  ;;  %v158_v50 = vld [vmem:[#allocation5 + $0x200] sm:$0xff] }
  0x42   :  { %v157_v43 = vld [vmem:[#allocation5 + $0x1f8] sm:$0xff]  ;;  %v405_v46 = vadd.f32 %v369_v34, %v333_v31  ;;  %v370_v47 = vmul.f32 %v298_v35, %v298_v35  ;;  %v300_v49 = vsub.f32 %v156_v32, %v228_v33  ;;  %v194_v51 = vld [vmem:[#allocation2 + $0xe0] sm:$0xff]  ;;  %511 = vst [vmem:[#allocation7 + $0xa8] sm:$0xff] %v403_v29  ;;  %v265_v55 = vsub.f32 %v121_v38, %v193_v39  ;;  %v123_v56 = vld [vmem:[#allocation5 + $0xe8] sm:$0xff] }
  0x43   :  { %v229_v44 = vld [vmem:[#allocation2 + $0x1f8] sm:$0xff]  ;;  %v230_v52 = vld [vmem:[#allocation2 + $0x200] sm:$0xff]  ;;  %v371_v53 = vmul.f32 %v299_v41, %v299_v41  ;;  %v336_v54 = vmul.f32 %v264_v42, %v264_v42  ;;  %v195_v57 = vld [vmem:[#allocation2 + $0xe8] sm:$0xff]  ;;  %512 = vst [vmem:[#allocation7 + $0xb0] sm:$0xff] %v404_v40  ;;  %v266_v2 = vsub.f32 %v122_v45, %v194_v51 }
  0x44   :  { %v406_v58 = vadd.f32 %v370_v47, %v334_v36  ;;  %v372_v59 = vmul.f32 %v300_v49, %v300_v49  ;;  %v301_v60 = vsub.f32 %v157_v43, %v229_v44  ;;  %v159_v61 = vld [vmem:[#allocation5 + $0x208] sm:$0xff]  ;;  %v124_v63 = vld [vmem:[#allocation5 + $0xf0] sm:$0xff]  ;;  %v337_v1 = vmul.f32 %v265_v55, %v265_v55  ;;  %513 = vst [vmem:[#allocation7 + $0xb8] sm:$0xff] %v405_v46  ;;  %v125_v10 = vld [vmem:[#allocation5 + $0xf8] sm:$0xff] }
  0x45   :  { %v231_v62 = vld [vmem:[#allocation2 + $0x208] sm:$0xff]  ;;  %v407_v0 = vadd.f32 %v371_v53, %v335_v48  ;;  %v302_v3 = vsub.f32 %v158_v50, %v230_v52  ;;  %v160_v4 = vld [vmem:[#allocation5 + $0x210] sm:$0xff]  ;;  %v267_v9 = vsub.f32 %v123_v56, %v195_v57  ;;  %v161_v11 = vld [vmem:[#allocation5 + $0x218] sm:$0xff]  ;;  %v338_v13 = vmul.f32 %v266_v2, %v266_v2 }
  0x46   :  { %v196_v5 = vld [vmem:[#allocation2 + $0xf0] sm:$0xff]  ;;  %v408_v7 = vadd.f32 %v372_v59, %v336_v54  ;;  %v373_v8 = vmul.f32 %v301_v60, %v301_v60  ;;  %v197_v12 = vld [vmem:[#allocation2 + $0xf8] sm:$0xff]  ;;  %v303_v15 = vsub.f32 %v159_v61, %v231_v62  ;;  %v126_v17 = vld [vmem:[#allocation5 + $0x100] sm:$0xff]  ;;  %514 = vst [vmem:[#allocation7 + $0xc0] sm:$0xff] %v406_v58 }
  0x47   :  { %v232_v6 = vld [vmem:[#allocation2 + $0x210] sm:$0xff]  ;;  %v374_v14 = vmul.f32 %v302_v3, %v302_v3  ;;  %v233_v16 = vld [vmem:[#allocation2 + $0x218] sm:$0xff]  ;;  %v198_v18 = vld [vmem:[#allocation2 + $0x100] sm:$0xff]  ;;  %v339_v20 = vmul.f32 %v267_v9, %v267_v9  ;;  %v268_v21 = vsub.f32 %v124_v63, %v196_v5  ;;  %515 = vst [vmem:[#allocation7 + $0xc8] sm:$0xff] %v407_v0  ;;  %v269_v27 = vsub.f32 %v125_v10, %v197_v12 }
  0x48   :  { %v409_v19 = vadd.f32 %v373_v8, %v337_v1  ;;  %v162_v22 = vld [vmem:[#allocation5 + $0x220] sm:$0xff]  ;;  %v375_v25 = vmul.f32 %v303_v15, %v303_v15  ;;  %v304_v26 = vsub.f32 %v160_v4, %v232_v6  ;;  %v127_v28 = vld [vmem:[#allocation5 + $0x108] sm:$0xff]  ;;  %516 = vst [vmem:[#allocation7 + $0xd0] sm:$0xff] %v408_v7  ;;  %v305_v32 = vsub.f32 %v161_v11, %v233_v16  ;;  %v128_v35 = vld [vmem:[#allocation5 + $0x110] sm:$0xff] }
  0x49   :  { %v234_v23 = vld [vmem:[#allocation2 + $0x220] sm:$0xff]  ;;  %v410_v24 = vadd.f32 %v374_v14, %v338_v13  ;;  %v163_v29 = vld [vmem:[#allocation5 + $0x228] sm:$0xff]  ;;  %v340_v31 = vmul.f32 %v268_v21, %v268_v21  ;;  %v270_v33 = vsub.f32 %v126_v17, %v198_v18  ;;  %v200_v36 = vld [vmem:[#allocation2 + $0x110] sm:$0xff]  ;;  %v341_v39 = vmul.f32 %v269_v27, %v269_v27 }
  0x4a   :  { %v199_v30 = vld [vmem:[#allocation2 + $0x108] sm:$0xff]  ;;  %v411_v37 = vadd.f32 %v375_v25, %v339_v20  ;;  %v376_v38 = vmul.f32 %v304_v26, %v304_v26  ;;  %v164_v40 = vld [vmem:[#allocation5 + $0x230] sm:$0xff]  ;;  %517 = vst [vmem:[#allocation7 + $0xd8] sm:$0xff] %v409_v19  ;;  %v377_v42 = vmul.f32 %v305_v32, %v305_v32  ;;  %v306_v43 = vsub.f32 %v162_v22, %v234_v23  ;;  %v129_v46 = vld [vmem:[#allocation5 + $0x118] sm:$0xff] }
  0x4b   :  { %v235_v34 = vld [vmem:[#allocation2 + $0x228] sm:$0xff]  ;;  %v236_v41 = vld [vmem:[#allocation2 + $0x230] sm:$0xff]  ;;  %v342_v44 = vmul.f32 %v270_v33, %v270_v33  ;;  %v271_v45 = vsub.f32 %v127_v28, %v199_v30  ;;  %v201_v47 = vld [vmem:[#allocation2 + $0x118] sm:$0xff]  ;;  %518 = vst [vmem:[#allocation7 + $0xe0] sm:$0xff] %v410_v24  ;;  %v272_v50 = vsub.f32 %v128_v35, %v200_v36 }
  0x4c   :  { %v412_v48 = vadd.f32 %v376_v38, %v340_v31  ;;  %v307_v49 = vsub.f32 %v163_v29, %v235_v34  ;;  %v165_v51 = vld [vmem:[#allocation5 + $0x238] sm:$0xff]  ;;  %v413_v53 = vadd.f32 %v377_v42, %v341_v39  ;;  %v378_v54 = vmul.f32 %v306_v43, %v306_v43  ;;  %519 = vst [vmem:[#allocation7 + $0xe8] sm:$0xff] %v411_v37 }
  0x4d   :  { %v237_v52 = vld [vmem:[#allocation2 + $0x238] sm:$0xff]  ;;  %v343_v55 = vmul.f32 %v271_v45, %v271_v45  ;;  %v308_v56 = vsub.f32 %v164_v40, %v236_v41  ;;  %v344_v58 = vmul.f32 %v272_v50, %v272_v50  ;;  %v273_v59 = vsub.f32 %v129_v46, %v201_v47 }
  0x4e   :  { %v379_v57 = vmul.f32 %v307_v49, %v307_v49  ;;  %v414_v60 = vadd.f32 %v378_v54, %v342_v44  ;;  %v309_v62 = vsub.f32 %v165_v51, %v237_v52  ;;  %520 = vst [vmem:[#allocation7 + $0xf0] sm:$0xff] %v412_v48  ;;  %521 = vst [vmem:[#allocation7 + $0xf8] sm:$0xff] %v413_v53 }
  0x4f   :  { %v380_v61 = vmul.f32 %v308_v56, %v308_v56  ;;  %v345_v0 = vmul.f32 %v273_v59, %v273_v59 }
  0x50   :  { %v415_v63 = vadd.f32 %v379_v57, %v343_v55  ;;  %v381_v2 = vmul.f32 %v309_v62, %v309_v62  ;;  %522 = vst [vmem:[#allocation7 + $0x100] sm:$0xff] %v414_v60 }
  0x51   :  { %v416_v1 = vadd.f32 %v380_v61, %v344_v58 }
  0x52   :  { %v417_v3 = vadd.f32 %v381_v2, %v345_v0  ;;  %523 = vst [vmem:[#allocation7 + $0x108] sm:$0xff] %v415_v63 }
  0x53   :  { %524 = vst [vmem:[#allocation7 + $0x110] sm:$0xff] %v416_v1 }
  0x54   :  { %525 = vst [vmem:[#allocation7 + $0x118] sm:$0xff] %v417_v3 }
  0x55   :  { %601 = shalt.err (!%p598_p0)
}
  0x56   :  { %537 = dma.vmem_to_hbm [thread:$0]  %s532_s1, 4608, %s656_s2, [#allocation4], %s617_s12, %s617_s12, %s618_s13  }
  0x57   :  { %614 = dma.done.wait [#allocation4], 4608  }
  0x58   :  { %615 = vsyncadd [#allocation4], 4294962688 }
  0x59   :  { %541 = vsyncpa [#allocation3], 1 }
  0x5a   :  { %542 = vsyncpa [#allocation6], 1 }
  0x5b   :  { %543 = vsyncpa [#allocation4], 1 }

</bundles_post_ra>
